<compile_context>
chip_gen: v7x
topology: tpu7x:2x2x1
jax: 0.10.0
libtpu: 0.0.40
codegen_flags: <defaults>
</compile_context>

<pallas_src>
import jax
import jax.numpy as jnp
from jax.experimental import pallas as pl
from jax.experimental.pallas import tpu as pltpu


def _make_standardnorm_kernel(n_valid: int):
    """Kernel over a (TB, N) tile; the block last dim equals the full array dim."""
    n = float(n_valid)

    def kernel(x_ref, o_ref):
        # Pass 1: mean over the flattened (C,H,W) axis
        # (== torch.mean(x, dim=[1,2,3], keepdim=True)).
        mean = jnp.sum(x_ref[...].astype(jnp.float32), axis=1, keepdims=True) * (
            jnp.float32(1.0 / n)
        )

        # Pass 2: unbiased variance (torch.std default, ddof=1).  Re-reads x_ref so
        # the centered full-tile value is consumed inside this pass only.
        xc = x_ref[...].astype(jnp.float32) - mean
        var = jnp.sum(xc * xc, axis=1, keepdims=True) * (jnp.float32(1.0 / (n - 1.0)))

        # sqrt + reciprocal only on the (TB, 1) stats vector; eps added to std
        # (not var) to match `x / (1e-10 + torch.std(x, ...))`.
        inv_std = 1.0 / (jnp.float32(1e-10) + jnp.sqrt(var))

        # Pass 3: output.  Re-reads x_ref (cheap VMEM loads) instead of keeping xc
        # live across the variance reduction.
        o_ref[...] = (
            (x_ref[...].astype(jnp.float32) - mean) * inv_std
        ).astype(o_ref.dtype)

    return kernel


def _choose_batch_tile(B: int, N: int, dtype) -> int:
    itemsize = jnp.dtype(dtype).itemsize
    # Sublane multiple for the packed dtype: 8 (f32), 16 (bf16), 32 (int8/fp8).
    sub = max(8, 32 // itemsize)

    if B <= sub:
        # Block dim equal to the full array dim is always legal.
        return B

    # ~2 MiB per (TB, N) buffer at the input dtype.  With in + out double-buffered
    # plus the transient f32 temps this stays inside v5e's 16 MiB scoped default
    # (and far inside 32 MiB on v6e / v7x; v7x physical VMEM is 64 MiB).
    target_bytes = 2 * 1024 * 1024
    tb = max(sub, (target_bytes // max(1, N * itemsize)) // sub * sub)

    # Megacore (v7x: 2 TensorCores) + DMA/compute overlap need >= 2 grid steps;
    # prefer >= 4 when the batch is big enough.
    min_steps = 4 if B >= 4 * sub else 2
    cap = max(sub, (B // min_steps) // sub * sub)
    return min(tb, cap)


def standardnorm(x):
    """x: (B, C, H, W) array. Per-sample standardization over dims [1, 2, 3]."""
    B, C, H, W = x.shape
    N = C * H * W
    if N < 2:
        raise ValueError("standardnorm needs >=2 elements per sample (unbiased std).")

    x2d = x.reshape(B, N)

    itemsize = jnp.dtype(x.dtype).itemsize
    TB = _choose_batch_tile(B, N, x.dtype)
    grid = (pl.cdiv(B, TB),)

    # Explicit VMEM budget from the actual tile footprint.  Mosaic pads the lane
    # dim to a multiple of 128 internally, so budget against the padded width.
    n_lanes = pl.cdiv(N, 128) * 128
    tile_in_bytes = TB * n_lanes * itemsize
    tile_f32_bytes = TB * n_lanes * 4
    vmem_limit = 4 * tile_in_bytes + 2 * tile_f32_bytes + (2 << 20)
    vmem_limit = int(min(max(vmem_limit, 8 * 1024 * 1024), 48 * 1024 * 1024))

    out2d = pl.pallas_call(
        _make_standardnorm_kernel(N),
        out_shape=jax.ShapeDtypeStruct((B, N), x.dtype),
        grid_spec=pl.GridSpec(
            grid=grid,
            in_specs=[pl.BlockSpec((TB, N), lambda i: (i, 0))],
            out_specs=pl.BlockSpec((TB, N), lambda i: (i, 0)),
        ),
        compiler_params=pltpu.CompilerParams(
            dimension_semantics=("parallel",),
            vmem_limit_bytes=vmem_limit,
        ),
        cost_estimate=pl.CostEstimate(
            flops=7 * B * N,
            transcendentals=2 * B,
            bytes_accessed=2 * B * N * itemsize,
        ),
    )(x2d)

    return out2d.reshape(B, C, H, W)


if __name__ == "__main__":
    key = jax.random.PRNGKey(0)
    # CIFAR-style conv activation: B=2, C=4, H=W=16  ->  N = 1024
    x = jax.random.normal(key, (2, 4, 16, 16), dtype=jnp.float32) * 3.0 + 1.5

    out = jax.block_until_ready(standardnorm(x))

    # plain-JAX reference (unbiased std, ddof=1, eps added to std) — matches torch
    mean_ref = jnp.mean(x, axis=(1, 2, 3), keepdims=True)
    std_ref = jnp.std(x, axis=(1, 2, 3), keepdims=True, ddof=1)
    ref = (x - mean_ref) / (1e-10 + std_ref)
    assert jnp.allclose(out, ref, atol=1e-5, rtol=1e-5), "mismatch vs reference"

    print("KERNEL_OK")
</pallas_src>

<mosaic_0001>
module attributes {stable_mosaic.version = 11 : i64} {
  func.func @kernel(%arg0: i32, %arg1: memref<2x1024xf32, #tpu.memory_space<vmem>>, %arg2: memref<2x1024xf32, #tpu.memory_space<vmem>>) attributes {dimension_semantics = [#tpu.dimension_semantics<parallel>], iteration_bounds = array<i64: 1>, scalar_prefetch = 0 : i64, scratch_operands = 0 : i64, tpu.core_type = #tpu.core_type<tc>, window_params = [{transform_indices = @transform_0, window_bounds = array<i64: 2, 1024>}, {transform_indices = @transform_1, window_bounds = array<i64: 2, 1024>}]} {
    %c0 = arith.constant 0 : index
    %c0_0 = arith.constant 0 : index
    %0 = vector.load %arg1[%c0, %c0_0] : memref<2x1024xf32, #tpu.memory_space<vmem>>, vector<2x1024xf32>
    %cst = arith.constant dense<0.000000e+00> : vector<2xf32>
    %1 = vector.multi_reduction <add>, %0, %cst [1] : vector<2x1024xf32> to vector<2xf32>
    %2 = vector.shape_cast %1 : vector<2xf32> to vector<2x1xf32>
    %cst_1 = arith.constant 9.765625E-4 : f32
    %3 = vector.broadcast %cst_1 : f32 to vector<2x1xf32>
    %4 = arith.mulf %2, %3 : vector<2x1xf32>
    %c0_2 = arith.constant 0 : index
    %c0_3 = arith.constant 0 : index
    %5 = vector.load %arg1[%c0_2, %c0_3] : memref<2x1024xf32, #tpu.memory_space<vmem>>, vector<2x1024xf32>
    %6 = vector.broadcast %4 : vector<2x1xf32> to vector<2x1024xf32>
    %7 = arith.subf %5, %6 : vector<2x1024xf32>
    %8 = arith.mulf %7, %7 : vector<2x1024xf32>
    %cst_4 = arith.constant dense<0.000000e+00> : vector<2xf32>
    %9 = vector.multi_reduction <add>, %8, %cst_4 [1] : vector<2x1024xf32> to vector<2xf32>
    %10 = vector.shape_cast %9 : vector<2xf32> to vector<2x1xf32>
    %cst_5 = arith.constant 9.77517105E-4 : f32
    %11 = vector.broadcast %cst_5 : f32 to vector<2x1xf32>
    %12 = arith.mulf %10, %11 : vector<2x1xf32>
    %13 = math.sqrt %12 : vector<2x1xf32>
    %cst_6 = arith.constant 1.000000e-10 : f32
    %14 = vector.broadcast %cst_6 : f32 to vector<2x1xf32>
    %15 = arith.addf %14, %13 : vector<2x1xf32>
    %cst_7 = arith.constant 1.000000e+00 : f32
    %16 = vector.broadcast %cst_7 : f32 to vector<2x1xf32>
    %17 = arith.divf %16, %15 : vector<2x1xf32>
    %c0_8 = arith.constant 0 : index
    %c0_9 = arith.constant 0 : index
    %18 = vector.load %arg1[%c0_8, %c0_9] : memref<2x1024xf32, #tpu.memory_space<vmem>>, vector<2x1024xf32>
    %19 = vector.broadcast %4 : vector<2x1xf32> to vector<2x1024xf32>
    %20 = arith.subf %18, %19 : vector<2x1024xf32>
    %21 = vector.broadcast %17 : vector<2x1xf32> to vector<2x1024xf32>
    %22 = arith.mulf %20, %21 : vector<2x1024xf32>
    %c0_10 = arith.constant 0 : index
    %c0_11 = arith.constant 0 : index
    %23 = vector.load %arg2[%c0_10, %c0_11] : memref<2x1024xf32, #tpu.memory_space<vmem>>, vector<2x1024xf32>
    tpu.vector_store %arg2[%c0_10, %c0_11], %22 {strides = array<i32>} : memref<2x1024xf32, #tpu.memory_space<vmem>>, vector<2x1024xf32>,
    return
  }
  func.func @transform_0(%arg0: i32) -> (i32, i32) {
    %c0_i32 = arith.constant 0 : i32
    %c0_i32_0 = arith.constant 0 : i32
    return %arg0, %c0_i32 : i32, i32
  }
  func.func @transform_1(%arg0: i32) -> (i32, i32) {
    %c0_i32 = arith.constant 0 : i32
    %c0_i32_0 = arith.constant 0 : i32
    return %arg0, %c0_i32 : i32, i32
  }
}

</mosaic_0001>

<bundles_post_ra>
// kernel: tpu_custom_call.1
= control target key start
LH: loop header
LB: loop body
LE: loop exit
PB: predicated region body
PF: predicated region fallthrough
CT: control target
= control target key end

     0   :  { %6 = vsyncpa [#allocation3], 0  ;;  %s311_s0 = inlined_call_operand.hbm [shape: f32[2,1024], index: 0, kind: input, shape index: {}]   ;;  %s312_s1 = inlined_call_operand.hbm [shape: f32[2,1024], index: 1, kind: output, shape index: {}]  }
   0x1   :  { %7 = vsyncpa [#allocation4], 0  ;;  %s257_s6 = smov [#allocation2]   ;;  %s209_s10 = scalar_lea.hbm %s311_s0, 256 }
   0x2   :  { %s14_s7 = sshll.u32 %s257_s6, 4  ;;  %p210_p0 = scmp.ne.s32.totalorder %s311_s0, %s209_s10  ;;  %s15_s7 = int_to_ptr.vmem [resolvable:$true] %s14_s7 }
   0x3   :  { %p213_p1 = scmp.lt.u32.totalorder %s209_s10, %s311_s0 }
   0x5   :  { %p215_p2 = pnand %p213_p1, %p210_p0 }
   0x7   :  { %218 = shalt.err (!%p215_p2)
}
   0x8   :  { %s219_s15 = scalar_lea.vmem %s15_s7, 256  ;;  %p224_p4 = scmp.lt.s32.totalorder %s15_s7, %s15_s7 }
   0x9   :  { %p220_p3 = scmp.ne.s32.totalorder %s15_s7, %s219_s15  ;;  %p225_p5 = scmp.lt.s32.totalorder %s219_s15, %s219_s15 }
   0xb   :  { %p226_p6 = por %p225_p5, %p224_p4 }
   0xd   :  { %p227_p7 = pnand %p226_p6, %p220_p3 }
   0xf   :  { %230 = shalt.err (!%p227_p7)
}
  0x10   :  { %17 = dma.hbm_to_vmem [thread:$0]  %s311_s0, 256, %s15_s7, [#allocation3]  }
  0x11   :  { %253 = dma.done.wait [#allocation3], 256  }
  0x12   :  { %254 = vsyncadd [#allocation3], 4294967040  ;;  %v29_v0 = vlaneseq  ;;  %v258_v1 = vmov 1983009808   ;;  %v21_v6 = vld [vmem:[#allocation2] sm:$0xff]  ;;  %v22_v7 = vld [vmem:[#allocation2 + $0x8] sm:$0xff] }
  0x13   :  { %v27_v2 = vunpack.c.l.s4 %v258_v1  ;;  %v25_v8 = vcombine.high %v21_v6, %v21_v6  ;;  %vm67_vm0 = vcmask 1041408   ;;  %v42_v12 = vcombine.high %v22_v7, %v22_v7  ;;  %s260_s0 = smov [#allocation5]  }
  0x14   :  { %v30_v3 = vshrl.u32 %v29_v0, 7  ;;  %v259_v33 = vmov 269488144   ;;  %s190_s18 = sshll.u32 %s260_s0, 4  ;;  %s191_s18 = int_to_ptr.vmem [resolvable:$true] %s190_s18 }
  0x15   :  { %v28_v4 = vunpack.c.0.s8 %v27_v2  ;;  %v88_v34 = vunpack.c.l.s4 %v259_v33  ;;  %s231_s19 = scalar_lea.vmem %s191_s18, 256  ;;  %p236_p9 = scmp.lt.s32.totalorder %s191_s18, %s191_s18 }
  0x16   :  { %p232_p8 = scmp.ne.s32.totalorder %s191_s18, %s231_s19  ;;  %p237_p10 = scmp.lt.s32.totalorder %s231_s19, %s231_s19 }
  0x17   :  { %v31_v5 = vsub.s32 %v28_v4, %v30_v3  ;;  %v89_v35 = vunpack.c.0.s8 %v88_v34 }
  0x18   :  { %p238_p11 = por %p237_p10, %p236_p9 }
  0x19   :  { %v32_v9 = vrot.slane %v21_v6, %v31_v5  ;;  %v39_v10 = vrot.slane %v25_v8, %v31_v5  ;;  %v49_v13 = vrot.slane %v22_v7, %v31_v5  ;;  %v56_v19 = vrot.slane %v42_v12, %v31_v5 }
  0x1a   :  { %v92_v36 = vsub.s32 %v89_v35, %v30_v3  ;;  %p239_p12 = pnand %p238_p11, %p232_p8 }
  0x1b   :  { %v40_v11 = vcombine.high %v32_v9, %v32_v9  ;;  %v68_v14 = vsel %vm67_vm0, %v32_v9, 0.0  ;;  %v41_v15 = vcombine.high %v39_v10, %v39_v10  ;;  %v71_v17 = vsel %vm67_vm0, %v39_v10, 0.0 }
  0x1c   :  { %v57_v20 = vcombine.high %v49_v13, %v49_v13  ;;  %v75_v23 = vsel %vm67_vm0, %v49_v13, 0.0  ;;  %v58_v25 = vcombine.high %v56_v19, %v56_v19  ;;  %v79_v28 = vsel %vm67_vm0, %v56_v19, 0.0 }
  0x1d   :  { %v69_v16 = vsel %vm67_vm0, %v40_v11, 0.0  ;;  %v73_v21 = vsel %vm67_vm0, %v41_v15, 0.0 }
  0x1e   :  { %v70_v18 = vadd.f32 %v69_v16, %v68_v14  ;;  %v77_v26 = vsel %vm67_vm0, %v57_v20, 0.0  ;;  %v81_v30 = vsel %vm67_vm0, %v58_v25, 0.0 }
  0x20   :  { %v72_v22 = vadd.f32 %v71_v17, %v70_v18 }
  0x22   :  { %v74_v24 = vadd.f32 %v73_v21, %v72_v22 }
  0x24   :  { %v76_v27 = vadd.f32 %v75_v23, %v74_v24 }
  0x26   :  { %v78_v29 = vadd.f32 %v77_v26, %v76_v27 }
  0x28   :  { %v80_v31 = vadd.f32 %v79_v28, %v78_v29 }
  0x2a   :  { %v82_v32 = vadd.f32 %v81_v30, %v80_v31 }
  0x2c   :  { %83 = vadd.xlane.f32.xlu0 %v82_v32 }
  0xb9   :  { %v84_v37 = vpop.xlane.xlu0 %83 }
  0xba   :  { %v85_v38 = vmul.f32 0.0009765625, %v84_v37 }
  0xbc   :  { %v93_v39 = vrot.slane %v85_v38, %v92_v36 }
  0xbe   :  { %v95_v40 = vsub.f32 %v21_v6, %v93_v39  ;;  %v96_v41 = vsub.f32 %v22_v7, %v93_v39 }
  0xc0   :  { %v97_v42 = vmul.f32 %v95_v40, %v95_v40  ;;  %v98_v43 = vmul.f32 %v96_v41, %v96_v41 }
  0xc2   :  { %v101_v44 = vcombine.high %v97_v42, %v97_v42  ;;  %v108_v45 = vrot.slane %v97_v42, %v31_v5  ;;  %v125_v48 = vrot.slane %v98_v43, %v31_v5  ;;  %v118_v52 = vcombine.high %v98_v43, %v98_v43 }
  0xc4   :  { %v115_v46 = vrot.slane %v101_v44, %v31_v5  ;;  %v116_v47 = vcombine.high %v108_v45, %v108_v45  ;;  %v143_v49 = vsel %vm67_vm0, %v108_v45, 0.0  ;;  %v132_v56 = vrot.slane %v118_v52, %v31_v5 }
  0xc5   :  { %v133_v57 = vcombine.high %v125_v48, %v125_v48  ;;  %v150_v60 = vsel %vm67_vm0, %v125_v48, 0.0 }
  0xc6   :  { %v144_v50 = vsel %vm67_vm0, %v116_v47, 0.0  ;;  %v117_v51 = vcombine.high %v115_v46, %v115_v46  ;;  %v146_v54 = vsel %vm67_vm0, %v115_v46, 0.0  ;;  %v134_v62 = vcombine.high %v132_v56, %v132_v56 }
  0xc7   :  { %v145_v53 = vadd.f32 %v144_v50, %v143_v49  ;;  %v152_v63 = vsel %vm67_vm0, %v133_v57, 0.0  ;;  %v154_v1 = vsel %vm67_vm0, %v132_v56, 0.0 }
  0xc8   :  { %v148_v58 = vsel %vm67_vm0, %v117_v51, 0.0  ;;  %v156_v3 = vsel %vm67_vm0, %v134_v62, 0.0 }
  0xc9   :  { %v147_v55 = vadd.f32 %v146_v54, %v145_v53 }
  0xcb   :  { %v149_v59 = vadd.f32 %v148_v58, %v147_v55 }
  0xcd   :  { %v151_v61 = vadd.f32 %v150_v60, %v149_v59 }
  0xcf   :  { %v153_v0 = vadd.f32 %v152_v63, %v151_v61 }
  0xd1   :  { %v155_v2 = vadd.f32 %v154_v1, %v153_v0 }
  0xd3   :  { %v157_v4 = vadd.f32 %v156_v3, %v155_v2 }
  0xd5   :  { %158 = vadd.xlane.f32.xlu0 %v157_v4 }
 0x162   :  { %v159_v6 = vpop.xlane.xlu0 %158 }
 0x163   :  { %v160_v5 = vmul.f32 0.0009775171, %v159_v6 }
 0x165   :  { %205 = vrsqrt.f32 %v160_v5  ;;  %vm163_vm1 = vcmp.eq.f32.partialorder %v160_v5, inf  ;;  %v166_v9 = vand.u32 2147483648, %v160_v5  ;;  %vm165_vm2 = vcmp.eq.f32.partialorder %v160_v5, 0.0 }
 0x16f   :  { %v206_v7 = vpop.eup %205 }
 0x170   :  { %v162_v8 = vmul.f32 %v206_v7, %v160_v5 }
 0x172   :  { %v164_v10 = vsel %vm163_vm1, %v160_v5, %v162_v8 }
 0x173   :  { %v167_v11 = vsel %vm165_vm2, %v166_v9, %v164_v10 }
 0x174   :  { %v168_v12 = vadd.f32 1e-10, %v167_v11 }
 0x176   :  { %207 = vrcp.f32 %v168_v12 }
 0x180   :  { %v208_v13 = vpop.eup %207 }
 0x181   :  { %v178_v14 = vrot.slane %v208_v13, %v92_v36 }
 0x183   :  { %v180_v15 = vmul.f32 %v178_v14, %v95_v40  ;;  %v181_v16 = vmul.f32 %v178_v14, %v96_v41 }
 0x185   :  { %182 = vst [vmem:[#allocation5] sm:$0xff] %v180_v15  ;;  %183 = vst [vmem:[#allocation5 + $0x8] sm:$0xff] %v181_v16 }
 0x186   :  { %242 = shalt.err (!%p239_p12)
}
 0x187   :  { %s243_s22 = scalar_lea.hbm %s312_s1, 256 }
 0x188   :  { %p244_p13 = scmp.ne.s32.totalorder %s312_s1, %s243_s22  ;;  %p247_p0 = scmp.lt.u32.totalorder %s243_s22, %s312_s1 }
 0x18a   :  { %p249_p1 = pnand %p247_p0, %p244_p13 }
 0x18c   :  { %252 = shalt.err (!%p249_p1)
}
 0x18d   :  { %193 = dma.vmem_to_hbm [thread:$0]  %s191_s18, 256, %s312_s1, [#allocation4]  }
 0x18e   :  { %255 = dma.done.wait [#allocation4], 256  }
 0x18f   :  { %256 = vsyncadd [#allocation4], 4294967040 }
 0x190   :  { %197 = vsyncpa [#allocation3], 1 }
 0x191   :  { %198 = vsyncpa [#allocation4], 1 }

</bundles_post_ra>
